<compile_context>
chip_gen: v7x
topology: tpu7x:2x2x1
jax: 0.10.0
libtpu: 0.0.40
codegen_flags: <defaults>
</compile_context>

<pallas_src>
import jax
import jax.numpy as jnp
from jax import lax
from jax.experimental import pallas as pl
from jax.experimental.pallas import tpu as pltpu


def _round_up(a, m):
    return -(-a // m) * m


# -----------------------------------------------------------------------------
# Kernel
# -----------------------------------------------------------------------------
def lstm_kernel(x_ref, wih_ref, whh_ref, wfc_ref, bfc_ref, out_ref,
                gx_sc, h_sc, c_sc):
    """One grid step = (batch shard s, time chunk ci).

    x_ref   : (Tc*Bps, D+1) bf16  time-major chunk, last column == 1 (bias fold)
    wih_ref : (D+1, 4*Hg)   bf16  [W_ih^T ; b_ih+b_hh], gates packed i|f|g|o
    whh_ref : (Hg, 4*Hg)    bf16
    wfc_ref : (Hg, Op)      bf16
    bfc_ref : (1, Op)       f32
    out_ref : (Bps, Op)     f32   lane-dense output block for this shard
    gx_sc   : (Tc*Bps,4*Hg) f32   input-projection scratch (chunk-sized only)
    h_sc/c_sc: (Bps, Hg)    f32   recurrent carries (persist across chunks)
    """
    ci = pl.program_id(1)
    n_chunks = pl.num_programs(1)

    Bps, Hg = h_sc.shape
    Tc = gx_sc.shape[0] // Bps                 # static Python int

    # ---- Phase 1: input projection (+bias via the ones column) for this chunk.
    gx_sc[...] = jnp.dot(x_ref[...], wih_ref[...],
                         preferred_element_type=jnp.float32)

    # Lane masks so a single tanh covers both sigmoid (i,f,o) and tanh (g):
    #   sigmoid(x) = 0.5*tanh(0.5*x) + 0.5
    lane = lax.broadcasted_iota(jnp.int32, (1, 4 * Hg), 1)
    is_g = jnp.logical_and(lane >= 2 * Hg, lane < 3 * Hg)
    pre = jnp.where(is_g, 1.0, 0.5).astype(jnp.float32)     # pre- and post-scale
    padd = jnp.where(is_g, 0.0, 0.5).astype(jnp.float32)

    whh = whh_ref[...]                         # bf16, hoisted out of the loop

    @pl.when(ci == 0)
    def _init():
        h_sc[...] = jnp.zeros_like(h_sc)
        c_sc[...] = jnp.zeros_like(c_sc)

    # ---- Phase 2: sequential recurrence over this chunk's timesteps.
    def step(t, carry):
        h, c = carry                           # f32 carries
        row = pl.multiple_of(t * Bps, 8)       # Bps % 16 == 0 -> aligned slice
        gates = (jnp.dot(h.astype(jnp.bfloat16), whh,
                         preferred_element_type=jnp.float32)
                 + gx_sc[pl.ds(row, Bps), :])              # (Bps, 4*Hg) f32
        act = jnp.tanh(gates * pre) * pre + padd           # one EUP push/step
        i_g = act[:, 0 * Hg:1 * Hg]
        f_g = act[:, 1 * Hg:2 * Hg]
        g_g = act[:, 2 * Hg:3 * Hg]
        o_g = act[:, 3 * Hg:4 * Hg]
        c_new = f_g * c + i_g * g_g
        h_new = o_g * jnp.tanh(c_new)
        return h_new, c_new

    # Partial unroll: full unroll only for tiny chunks (avoids vreg spills).
    unroll = Tc if Tc <= 8 else max(u for u in range(1, 9) if Tc % u == 0)
    h_t, c_t = lax.fori_loop(0, Tc, step, (h_sc[...], c_sc[...]), unroll=unroll)
    h_sc[...] = h_t
    c_sc[...] = c_t

    # ---- Phase 3: final FC on the last hidden state (lane-dense output block).
    @pl.when(ci == n_chunks - 1)
    def _finalize():
        out_ref[...] = (jnp.dot(h_t.astype(jnp.bfloat16), wfc_ref[...],
                                preferred_element_type=jnp.float32)
                        + bfc_ref[...]).astype(out_ref.dtype)


# -----------------------------------------------------------------------------
# Wrapper
# -----------------------------------------------------------------------------
def _pick_chunk_t(T, Bps, D1, Hg, max_chunk_t=None, budget_bytes=4 << 20):
    """Largest divisor of T whose chunk (double-buffered bf16 x + f32 gx) fits
    the per-chunk VMEM budget."""
    per_t = Bps * (4 * D1 + 16 * Hg)           # bytes per timestep
    tc = max(1, min(T, budget_bytes // per_t))
    if max_chunk_t is not None:
        tc = min(tc, int(max_chunk_t))
    while T % tc:
        tc -= 1
    return tc


def _pick_vmem_limit(needed_bytes):
    """Explicit scoped-VMEM limit: at least what we need (v5e default is only
    16 MiB), capped well below physical capacity (64 MiB v7x, 128 MiB v5e/v6e)."""
    try:
        cap = int(pltpu.get_tpu_info().vmem_capacity_bytes)
    except Exception:
        cap = 64 << 20                          # conservative: v7x physical
    return int(min(max(needed_bytes, 32 << 20), cap * 3 // 4))


def lstm_model_forward(x, packed, output_dim, *, batch_shards=None,
                       max_chunk_t=None):
    """x: (B, T, D) f32.  packed: pack_params(...) output.  -> (B, output_dim)."""
    wih_t, whh_t, wfc_t, bfc = packed
    B, T, D = x.shape
    D1 = wih_t.shape[0]
    Hg = whh_t.shape[0]
    Op = wfc_t.shape[1]
    assert D1 == D + 1 and whh_t.shape[1] == 4 * Hg

    # Batch shards: use both v7x TensorCores once the batch is big enough.
    if batch_shards is None:
        batch_shards = 2 if B >= 32 else 1
    S = batch_shards
    # bf16 packs 2 rows per sublane -> pad each shard's batch to a multiple of 16.
    Bps = _round_up(max(1, -(-B // S)), 16)
    Bp = S * Bps

    # Time-major, shard-major layout with a ones column (bias folded into the
    # Phase-1 matmul).  bf16 cast halves the x HBM->VMEM DMA bytes.
    x_tm = jnp.transpose(x, (1, 0, 2))                         # (T, B, D)
    x_tm = jnp.pad(x_tm, ((0, 0), (0, Bp - B), (0, 0)))        # (T, Bp, D)
    ones = jnp.ones((T, Bp, 1), x_tm.dtype)
    x_aug = jnp.concatenate([x_tm, ones], axis=-1)             # (T, Bp, D+1)
    x2 = (x_aug.reshape(T, S, Bps, D1)
               .transpose(1, 0, 2, 3)                          # (S, T, Bps, D+1)
               .reshape(S * T * Bps, D1)
               .astype(jnp.bfloat16))

    Tc = _pick_chunk_t(T, Bps, D1, Hg, max_chunk_t)
    n_chunks = T // Tc

    cost = pl.CostEstimate(
        flops=(2 * S * T * Bps * D1 * 4 * Hg           # input projection
               + 2 * S * T * Bps * Hg * 4 * Hg         # recurrence
               + 2 * S * Bps * Hg * Op),               # final FC
        transcendentals=5 * S * T * Bps * Hg,
        bytes_accessed=(x2.size * 2
                        + (wih_t.size + whh_t.size + wfc_t.size) * 2
                        + bfc.size * 4 + S * Bps * Op * 4),
    )

    needed = (2 * Tc * Bps * D1 * 2                        # x chunk, dbl-buffered bf16
              + 2 * ((D1 + Hg) * 4 * Hg + Hg * Op) * 2     # bf16 weights, dbl-buffered
              + 2 * Op * 4 + 2 * Bps * Op * 4              # fc bias + output
              + (Tc * Bps * 4 * Hg + 2 * Bps * Hg) * 4)    # f32 scratch
    vmem_limit = _pick_vmem_limit(int(needed * 1.5) + (1 << 20))

    grid_spec = pltpu.PrefetchScalarGridSpec(
        num_scalar_prefetch=0,
        grid=(S, n_chunks),
        in_specs=[
            # x: one (Tc*Bps, D+1) chunk per grid step; flat row-block index.
            pl.BlockSpec((Tc * Bps, D1), lambda s, c: (s * n_chunks + c, 0)),
            # Weights: constant block index -> fetched once, stay VMEM-resident.
            pl.BlockSpec((D1, 4 * Hg), lambda s, c: (0, 0)),
            pl.BlockSpec((Hg, 4 * Hg), lambda s, c: (0, 0)),
            pl.BlockSpec((Hg, Op), lambda s, c: (0, 0)),
            pl.BlockSpec((1, Op), lambda s, c: (0, 0)),
        ],
        out_specs=pl.BlockSpec((Bps, Op), lambda s, c: (s, 0)),
        scratch_shapes=[
            # gx chunk kept f32 here (chunk-sized); bf16 is an option to relieve
            # the v5e vst slot / v7x VMEM if the chunk budget is raised.
            pltpu.VMEM((Tc * Bps, 4 * Hg), jnp.float32),
            pltpu.VMEM((Bps, Hg), jnp.float32),            # h carry
            pltpu.VMEM((Bps, Hg), jnp.float32),            # c carry
        ],
    )

    out_padded = pl.pallas_call(
        lstm_kernel,
        out_shape=jax.ShapeDtypeStruct((S * Bps, Op), jnp.float32),
        grid_spec=grid_spec,
        compiler_params=pltpu.CompilerParams(
            dimension_semantics=("parallel", "arbitrary"),
            vmem_limit_bytes=vmem_limit),
        cost_estimate=cost,
    )(x2, wih_t, whh_t, wfc_t, bfc)

    return out_padded[:B, :output_dim]


# -----------------------------------------------------------------------------
# Params (PyTorch layout) + packing + pure-JAX reference
# -----------------------------------------------------------------------------
def init_params(key, input_dim, hidden_dim, output_dim):
    """Raw PyTorch-layout params with U(-1/sqrt(H), 1/sqrt(H)) init."""
    k = 1.0 / jnp.sqrt(jnp.float32(hidden_dim))
    keys = jax.random.split(key, 6)
    w_ih = jax.random.uniform(keys[0], (4 * hidden_dim, input_dim), jnp.float32, -k, k)
    w_hh = jax.random.uniform(keys[1], (4 * hidden_dim, hidden_dim), jnp.float32, -k, k)
    b_ih = jax.random.uniform(keys[2], (4 * hidden_dim,), jnp.float32, -k, k)
    b_hh = jax.random.uniform(keys[3], (4 * hidden_dim,), jnp.float32, -k, k)
    w_fc = jax.random.uniform(keys[4], (output_dim, hidden_dim), jnp.float32, -k, k)
    b_fc = jax.random.uniform(keys[5], (output_dim,), jnp.float32, -k, k)
    return (w_ih, w_hh, b_ih, b_hh, w_fc, b_fc)


def pack_params(raw, Hg=None, Op=None):
    """Transpose + pad params for the kernel: gates packed contiguously i|f|g|o
    with per-gate width Hg = round_up(H, 32); bias (b_ih+b_hh) appended as an
    extra input row (consumed by the ones column); MXU operands cast to bf16;
    FC output padded to a lane-dense Op >= 128 block.  Zero-padded gate
    channels provably stay zero in h/c (0.5*0 + 0.5*tanh(0) = 0)."""
    w_ih, w_hh, b_ih, b_hh, w_fc, b_fc = raw
    H = w_hh.shape[1]
    D = w_ih.shape[1]
    O = w_fc.shape[0]
    if Hg is None:
        Hg = _round_up(H, 32)
    if Op is None:
        Op = max(128, _round_up(O, 128))

    wih_t = jnp.zeros((D + 1, 4 * Hg), jnp.float32)
    whh_t = jnp.zeros((Hg, 4 * Hg), jnp.float32)
    for k in range(4):                          # PyTorch gate order: i, f, g, o
        wih_t = wih_t.at[:D, k * Hg:k * Hg + H].set(w_ih[k * H:(k + 1) * H, :].T)
        wih_t = wih_t.at[D, k * Hg:k * Hg + H].set(
            b_ih[k * H:(k + 1) * H] + b_hh[k * H:(k + 1) * H])
        whh_t = whh_t.at[:H, k * Hg:k * Hg + H].set(w_hh[k * H:(k + 1) * H, :].T)
    wfc_t = jnp.zeros((Hg, Op), jnp.float32).at[:H, :O].set(w_fc.T)
    bfc = jnp.zeros((1, Op), jnp.float32).at[0, :O].set(b_fc)
    return (wih_t.astype(jnp.bfloat16), whh_t.astype(jnp.bfloat16),
            wfc_t.astype(jnp.bfloat16), bfc)


def reference_forward(x, raw):
    """Pure-JAX f32 reference matching nn.LSTM (gate order i,f,g,o) + nn.Linear."""
    w_ih, w_hh, b_ih, b_hh, w_fc, b_fc = raw
    B, T, D = x.shape
    H = w_hh.shape[1]

    def step(carry, x_t):
        h, c = carry
        gates = x_t @ w_ih.T + h @ w_hh.T + b_ih + b_hh
        i = jax.nn.sigmoid(gates[:, 0 * H:1 * H])
        f = jax.nn.sigmoid(gates[:, 1 * H:2 * H])
        g = jnp.tanh(gates[:, 2 * H:3 * H])
        o = jax.nn.sigmoid(gates[:, 3 * H:4 * H])
        c = f * c + i * g
        h = o * jnp.tanh(c)
        return (h, c), None

    h0 = jnp.zeros((B, H), jnp.float32)
    c0 = jnp.zeros((B, H), jnp.float32)
    (hT, _), _ = lax.scan(step, (h0, c0), jnp.transpose(x, (1, 0, 2)))
    return hT @ w_fc.T + b_fc


if __name__ == "__main__":
    def run_case(kx, kp, B, T, D, H, O, **kw):
        x = jax.random.normal(kx, (B, T, D), jnp.float32)
        raw = init_params(kp, D, H, O)
        packed = pack_params(raw)
        out = jax.block_until_ready(lstm_model_forward(x, packed, O, **kw))
        ref = reference_forward(x, raw)
        assert out.shape == (B, O)
        # bf16 MXU operands vs f32 reference -> relaxed tolerance.
        err = float(jnp.max(jnp.abs(out - ref)))
        assert jnp.allclose(out, ref, atol=2e-2, rtol=2e-2), err
        return out

    root = jax.random.PRNGKey(0)
    k = jax.random.split(root, 4)

    # Small shapes consistent with the module: batch=2, seq=8, input=28,
    # hidden=32, out=10 (single chunk, single shard).
    run_case(k[0], k[1], B=2, T=8, D=28, H=32, O=10)
    # Also exercise multi-chunk streaming (T=28 in 4 chunks of 7) and the
    # 2-shard batch split (dual TensorCore on v7x, sequential elsewhere).
    run_case(k[2], k[3], B=40, T=28, D=28, H=32, O=10,
             batch_shards=2, max_chunk_t=7)

    print("KERNEL_OK")
</pallas_src>

<mosaic_0001>
module attributes {stable_mosaic.version = 11 : i64} {
  func.func @lstm_kernel(%arg0: i32, %arg1: i32, %arg2: memref<128x29xbf16, #tpu.memory_space<vmem>>, %arg3: memref<29x128xbf16, #tpu.memory_space<vmem>>, %arg4: memref<32x128xbf16, #tpu.memory_space<vmem>>, %arg5: memref<32x128xbf16, #tpu.memory_space<vmem>>, %arg6: memref<1x128xf32, #tpu.memory_space<vmem>>, %arg7: memref<16x128xf32, #tpu.memory_space<vmem>>, %arg8: memref<128x128xf32, #tpu.memory_space<vmem>>, %arg9: memref<16x32xf32, #tpu.memory_space<vmem>>, %arg10: memref<16x32xf32, #tpu.memory_space<vmem>>) attributes {dimension_semantics = [#tpu.dimension_semantics<parallel>, #tpu.dimension_semantics<arbitrary>], iteration_bounds = array<i64: 1, 1>, scalar_prefetch = 0 : i64, scratch_operands = 3 : i64, tpu.core_type = #tpu.core_type<tc>, window_params = [{transform_indices = @transform_0, window_bounds = array<i64: 128, 29>}, {pipeline_mode = #tpu.pipeline_mode<synchronous>, transform_indices = @transform_1, window_bounds = array<i64: 29, 128>}, {pipeline_mode = #tpu.pipeline_mode<synchronous>, transform_indices = @transform_2, window_bounds = array<i64: 32, 128>}, {pipeline_mode = #tpu.pipeline_mode<synchronous>, transform_indices = @transform_3, window_bounds = array<i64: 32, 128>}, {pipeline_mode = #tpu.pipeline_mode<synchronous>, transform_indices = @transform_4, window_bounds = array<i64: 1, 128>}, {transform_indices = @transform_5, window_bounds = array<i64: 16, 128>}]} {
    %c0 = arith.constant 0 : index
    %c0_0 = arith.constant 0 : index
    %0 = vector.load %arg2[%c0, %c0_0] : memref<128x29xbf16, #tpu.memory_space<vmem>>, vector<128x29xbf16>
    %c0_1 = arith.constant 0 : index
    %c0_2 = arith.constant 0 : index
    %1 = vector.load %arg3[%c0_1, %c0_2] : memref<29x128xbf16, #tpu.memory_space<vmem>>, vector<29x128xbf16>
    %cst = arith.constant dense<0.000000e+00> : vector<128x128xf32>
    %2 = tpu.matmul %0, %1, %cst {dimension_numbers = #tpu.dot_dimension_numbers<[1], [0], [0], [1], [0, 0, 1, 1], [], []>} : vector<128x29xbf16>, vector<29x128xbf16>, vector<128x128xf32> -> vector<128x128xf32>
    %c0_3 = arith.constant 0 : index
    %c0_4 = arith.constant 0 : index
    %3 = vector.load %arg8[%c0_3, %c0_4] : memref<128x128xf32, #tpu.memory_space<vmem>>, vector<128x128xf32>
    tpu.vector_store %arg8[%c0_3, %c0_4], %2 {strides = array<i32>} : memref<128x128xf32, #tpu.memory_space<vmem>>, vector<128x128xf32>,
    %4 = tpu.iota {dimensions = array<i32: 1>} : vector<1x128xi32>
    %c64_i32 = arith.constant 64 : i32
    %5 = vector.broadcast %c64_i32 : i32 to vector<1x128xi32>
    %6 = arith.cmpi sge, %4, %5 : vector<1x128xi32>
    %c96_i32 = arith.constant 96 : i32
    %7 = vector.broadcast %c96_i32 : i32 to vector<1x128xi32>
    %8 = arith.cmpi slt, %4, %7 : vector<1x128xi32>
    %9 = arith.andi %6, %8 : vector<1x128xi1>
    %cst_5 = arith.constant 1.000000e+00 : f32
    %cst_6 = arith.constant 5.000000e-01 : f32
    %10 = vector.broadcast %cst_5 : f32 to vector<1x128xf32>
    %11 = vector.broadcast %cst_6 : f32 to vector<1x128xf32>
    %12 = arith.select %9, %10, %11 : vector<1x128xi1>, vector<1x128xf32>
    %cst_7 = arith.constant 0.000000e+00 : f32
    %cst_8 = arith.constant 5.000000e-01 : f32
    %13 = vector.broadcast %cst_7 : f32 to vector<1x128xf32>
    %14 = vector.broadcast %cst_8 : f32 to vector<1x128xf32>
    %15 = arith.select %9, %13, %14 : vector<1x128xi1>, vector<1x128xf32>
    %c0_9 = arith.constant 0 : index
    %c0_10 = arith.constant 0 : index
    %16 = vector.load %arg4[%c0_9, %c0_10] : memref<32x128xbf16, #tpu.memory_space<vmem>>, vector<32x128xbf16>
    %c0_i32 = arith.constant 0 : i32
    %17 = arith.cmpi eq, %arg1, %c0_i32 : i32
    %18 = arith.extui %17 : i1 to i32
    %c0_i32_11 = arith.constant 0 : i32
    %19 = arith.cmpi ne, %18, %c0_i32_11 : i32
    scf.if %19 {
      %cst_46 = arith.constant 0.000000e+00 : f32
      %211 = vector.broadcast %cst_46 : f32 to vector<16x32xf32>
      %c0_47 = arith.constant 0 : index
      %c0_48 = arith.constant 0 : index
      %212 = vector.load %arg9[%c0_47, %c0_48] : memref<16x32xf32, #tpu.memory_space<vmem>>, vector<16x32xf32>
      tpu.vector_store %arg9[%c0_47, %c0_48], %211 {strides = array<i32>} : memref<16x32xf32, #tpu.memory_space<vmem>>, vector<16x32xf32>,
      %cst_49 = arith.constant 0.000000e+00 : f32
      %213 = vector.broadcast %cst_49 : f32 to vector<16x32xf32>
      %c0_50 = arith.constant 0 : index
      %c0_51 = arith.constant 0 : index
      %214 = vector.load %arg10[%c0_50, %c0_51] : memref<16x32xf32, #tpu.memory_space<vmem>>, vector<16x32xf32>
      tpu.vector_store %arg10[%c0_50, %c0_51], %213 {strides = array<i32>} : memref<16x32xf32, #tpu.memory_space<vmem>>, vector<16x32xf32>,
    } else {
    }
    %c0_12 = arith.constant 0 : index
    %c0_13 = arith.constant 0 : index
    %20 = vector.load %arg9[%c0_12, %c0_13] : memref<16x32xf32, #tpu.memory_space<vmem>>, vector<16x32xf32>
    %c0_14 = arith.constant 0 : index
    %c0_15 = arith.constant 0 : index
    %21 = vector.load %arg10[%c0_14, %c0_15] : memref<16x32xf32, #tpu.memory_space<vmem>>, vector<16x32xf32>
    %c0_i32_16 = arith.constant 0 : i32
    %c16_i32 = arith.constant 16 : i32
    %22 = arith.muli %c0_i32_16, %c16_i32 : i32
    %23 = tpu.assume_multiple %22, 8 : i32
    %24 = arith.truncf %20 : vector<16x32xf32> to vector<16x32xbf16>
    %cst_17 = arith.constant dense<0.000000e+00> : vector<16x128xf32>
    %25 = tpu.matmul %24, %16, %cst_17 {dimension_numbers = #tpu.dot_dimension_numbers<[1], [0], [0], [1], [0, 0, 1, 1], [], []>} : vector<16x32xbf16>, vector<32x128xbf16>, vector<16x128xf32> -> vector<16x128xf32>
    %26 = arith.index_cast %23 : i32 to index
    %c0_18 = arith.constant 0 : index
    %27 = vector.load %arg8[%26, %c0_18] : memref<128x128xf32, #tpu.memory_space<vmem>>, vector<16x128xf32>
    %28 = arith.addf %25, %27 : vector<16x128xf32>
    %29 = vector.broadcast %12 : vector<1x128xf32> to vector<16x128xf32>
    %30 = arith.mulf %28, %29 : vector<16x128xf32>
    %31 = math.tanh %30 : vector<16x128xf32>
    %32 = vector.broadcast %12 : vector<1x128xf32> to vector<16x128xf32>
    %33 = arith.mulf %31, %32 : vector<16x128xf32>
    %34 = vector.broadcast %15 : vector<1x128xf32> to vector<16x128xf32>
    %35 = arith.addf %33, %34 : vector<16x128xf32>
    %36 = vector.extract_strided_slice %35 {offsets = [0, 0], sizes = [16, 32], strides = [1, 1]} : vector<16x128xf32> to vector<16x32xf32>
    %37 = vector.extract_strided_slice %35 {offsets = [0, 32], sizes = [16, 32], strides = [1, 1]} : vector<16x128xf32> to vector<16x32xf32>
    %38 = vector.extract_strided_slice %35 {offsets = [0, 64], sizes = [16, 32], strides = [1, 1]} : vector<16x128xf32> to vector<16x32xf32>
    %39 = vector.extract_strided_slice %35 {offsets = [0, 96], sizes = [16, 32], strides = [1, 1]} : vector<16x128xf32> to vector<16x32xf32>
    %40 = arith.mulf %37, %21 : vector<16x32xf32>
    %41 = arith.mulf %36, %38 : vector<16x32xf32>
    %42 = arith.addf %40, %41 : vector<16x32xf32>
    %43 = math.tanh %42 : vector<16x32xf32>
    %44 = arith.mulf %39, %43 : vector<16x32xf32>
    %c1_i32 = arith.constant 1 : i32
    %c16_i32_19 = arith.constant 16 : i32
    %45 = arith.muli %c1_i32, %c16_i32_19 : i32
    %46 = tpu.assume_multiple %45, 8 : i32
    %47 = arith.truncf %44 : vector<16x32xf32> to vector<16x32xbf16>
    %cst_20 = arith.constant dense<0.000000e+00> : vector<16x128xf32>
    %48 = tpu.matmul %47, %16, %cst_20 {dimension_numbers = #tpu.dot_dimension_numbers<[1], [0], [0], [1], [0, 0, 1, 1], [], []>} : vector<16x32xbf16>, vector<32x128xbf16>, vector<16x128xf32> -> vector<16x128xf32>
    %49 = arith.index_cast %46 : i32 to index
    %c0_21 = arith.constant 0 : index
    %50 = vector.load %arg8[%49, %c0_21] : memref<128x128xf32, #tpu.memory_space<vmem>>, vector<16x128xf32>
    %51 = arith.addf %48, %50 : vector<16x128xf32>
    %52 = vector.broadcast %12 : vector<1x128xf32> to vector<16x128xf32>
    %53 = arith.mulf %51, %52 : vector<16x128xf32>
    %54 = math.tanh %53 : vector<16x128xf32>
    %55 = vector.broadcast %12 : vector<1x128xf32> to vector<16x128xf32>
    %56 = arith.mulf %54, %55 : vector<16x128xf32>
    %57 = vector.broadcast %15 : vector<1x128xf32> to vector<16x128xf32>
    %58 = arith.addf %56, %57 : vector<16x128xf32>
    %59 = vector.extract_strided_slice %58 {offsets = [0, 0], sizes = [16, 32], strides = [1, 1]} : vector<16x128xf32> to vector<16x32xf32>
    %60 = vector.extract_strided_slice %58 {offsets = [0, 32], sizes = [16, 32], strides = [1, 1]} : vector<16x128xf32> to vector<16x32xf32>
    %61 = vector.extract_strided_slice %58 {offsets = [0, 64], sizes = [16, 32], strides = [1, 1]} : vector<16x128xf32> to vector<16x32xf32>
    %62 = vector.extract_strided_slice %58 {offsets = [0, 96], sizes = [16, 32], strides = [1, 1]} : vector<16x128xf32> to vector<16x32xf32>
    %63 = arith.mulf %60, %42 : vector<16x32xf32>
    %64 = arith.mulf %59, %61 : vector<16x32xf32>
    %65 = arith.addf %63, %64 : vector<16x32xf32>
    %66 = math.tanh %65 : vector<16x32xf32>
    %67 = arith.mulf %62, %66 : vector<16x32xf32>
    %c2_i32 = arith.constant 2 : i32
    %c16_i32_22 = arith.constant 16 : i32
    %68 = arith.muli %c2_i32, %c16_i32_22 : i32
    %69 = tpu.assume_multiple %68, 8 : i32
    %70 = arith.truncf %67 : vector<16x32xf32> to vector<16x32xbf16>
    %cst_23 = arith.constant dense<0.000000e+00> : vector<16x128xf32>
    %71 = tpu.matmul %70, %16, %cst_23 {dimension_numbers = #tpu.dot_dimension_numbers<[1], [0], [0], [1], [0, 0, 1, 1], [], []>} : vector<16x32xbf16>, vector<32x128xbf16>, vector<16x128xf32> -> vector<16x128xf32>
    %72 = arith.index_cast %69 : i32 to index
    %c0_24 = arith.constant 0 : index
    %73 = vector.load %arg8[%72, %c0_24] : memref<128x128xf32, #tpu.memory_space<vmem>>, vector<16x128xf32>
    %74 = arith.addf %71, %73 : vector<16x128xf32>
    %75 = vector.broadcast %12 : vector<1x128xf32> to vector<16x128xf32>
    %76 = arith.mulf %74, %75 : vector<16x128xf32>
    %77 = math.tanh %76 : vector<16x128xf32>
    %78 = vector.broadcast %12 : vector<1x128xf32> to vector<16x128xf32>
    %79 = arith.mulf %77, %78 : vector<16x128xf32>
    %80 = vector.broadcast %15 : vector<1x128xf32> to vector<16x128xf32>
    %81 = arith.addf %79, %80 : vector<16x128xf32>
    %82 = vector.extract_strided_slice %81 {offsets = [0, 0], sizes = [16, 32], strides = [1, 1]} : vector<16x128xf32> to vector<16x32xf32>
    %83 = vector.extract_strided_slice %81 {offsets = [0, 32], sizes = [16, 32], strides = [1, 1]} : vector<16x128xf32> to vector<16x32xf32>
    %84 = vector.extract_strided_slice %81 {offsets = [0, 64], sizes = [16, 32], strides = [1, 1]} : vector<16x128xf32> to vector<16x32xf32>
    %85 = vector.extract_strided_slice %81 {offsets = [0, 96], sizes = [16, 32], strides = [1, 1]} : vector<16x128xf32> to vector<16x32xf32>
    %86 = arith.mulf %83, %65 : vector<16x32xf32>
    %87 = arith.mulf %82, %84 : vector<16x32xf32>
    %88 = arith.addf %86, %87 : vector<16x32xf32>
    %89 = math.tanh %88 : vector<16x32xf32>
    %90 = arith.mulf %85, %89 : vector<16x32xf32>
    %c3_i32 = arith.constant 3 : i32
    %c16_i32_25 = arith.constant 16 : i32
    %91 = arith.muli %c3_i32, %c16_i32_25 : i32
    %92 = tpu.assume_multiple %91, 8 : i32
    %93 = arith.truncf %90 : vector<16x32xf32> to vector<16x32xbf16>
    %cst_26 = arith.constant dense<0.000000e+00> : vector<16x128xf32>
    %94 = tpu.matmul %93, %16, %cst_26 {dimension_numbers = #tpu.dot_dimension_numbers<[1], [0], [0], [1], [0, 0, 1, 1], [], []>} : vector<16x32xbf16>, vector<32x128xbf16>, vector<16x128xf32> -> vector<16x128xf32>
    %95 = arith.index_cast %92 : i32 to index
    %c0_27 = arith.constant 0 : index
    %96 = vector.load %arg8[%95, %c0_27] : memref<128x128xf32, #tpu.memory_space<vmem>>, vector<16x128xf32>
    %97 = arith.addf %94, %96 : vector<16x128xf32>
    %98 = vector.broadcast %12 : vector<1x128xf32> to vector<16x128xf32>
    %99 = arith.mulf %97, %98 : vector<16x128xf32>
    %100 = math.tanh %99 : vector<16x128xf32>
    %101 = vector.broadcast %12 : vector<1x128xf32> to vector<16x128xf32>
    %102 = arith.mulf %100, %101 : vector<16x128xf32>
    %103 = vector.broadcast %15 : vector<1x128xf32> to vector<16x128xf32>
    %104 = arith.addf %102, %103 : vector<16x128xf32>
    %105 = vector.extract_strided_slice %104 {offsets = [0, 0], sizes = [16, 32], strides = [1, 1]} : vector<16x128xf32> to vector<16x32xf32>
    %106 = vector.extract_strided_slice %104 {offsets = [0, 32], sizes = [16, 32], strides = [1, 1]} : vector<16x128xf32> to vector<16x32xf32>
    %107 = vector.extract_strided_slice %104 {offsets = [0, 64], sizes = [16, 32], strides = [1, 1]} : vector<16x128xf32> to vector<16x32xf32>
    %108 = vector.extract_strided_slice %104 {offsets = [0, 96], sizes = [16, 32], strides = [1, 1]} : vector<16x128xf32> to vector<16x32xf32>
    %109 = arith.mulf %106, %88 : vector<16x32xf32>
    %110 = arith.mulf %105, %107 : vector<16x32xf32>
    %111 = arith.addf %109, %110 : vector<16x32xf32>
    %112 = math.tanh %111 : vector<16x32xf32>
    %113 = arith.mulf %108, %112 : vector<16x32xf32>
    %c4_i32 = arith.constant 4 : i32
    %c16_i32_28 = arith.constant 16 : i32
    %114 = arith.muli %c4_i32, %c16_i32_28 : i32
    %115 = tpu.assume_multiple %114, 8 : i32
    %116 = arith.truncf %113 : vector<16x32xf32> to vector<16x32xbf16>
    %cst_29 = arith.constant dense<0.000000e+00> : vector<16x128xf32>
    %117 = tpu.matmul %116, %16, %cst_29 {dimension_numbers = #tpu.dot_dimension_numbers<[1], [0], [0], [1], [0, 0, 1, 1], [], []>} : vector<16x32xbf16>, vector<32x128xbf16>, vector<16x128xf32> -> vector<16x128xf32>
    %118 = arith.index_cast %115 : i32 to index
    %c0_30 = arith.constant 0 : index
    %119 = vector.load %arg8[%118, %c0_30] : memref<128x128xf32, #tpu.memory_space<vmem>>, vector<16x128xf32>
    %120 = arith.addf %117, %119 : vector<16x128xf32>
    %121 = vector.broadcast %12 : vector<1x128xf32> to vector<16x128xf32>
    %122 = arith.mulf %120, %121 : vector<16x128xf32>
    %123 = math.tanh %122 : vector<16x128xf32>
    %124 = vector.broadcast %12 : vector<1x128xf32> to vector<16x128xf32>
    %125 = arith.mulf %123, %124 : vector<16x128xf32>
    %126 = vector.broadcast %15 : vector<1x128xf32> to vector<16x128xf32>
    %127 = arith.addf %125, %126 : vector<16x128xf32>
    %128 = vector.extract_strided_slice %127 {offsets = [0, 0], sizes = [16, 32], strides = [1, 1]} : vector<16x128xf32> to vector<16x32xf32>
    %129 = vector.extract_strided_slice %127 {offsets = [0, 32], sizes = [16, 32], strides = [1, 1]} : vector<16x128xf32> to vector<16x32xf32>
    %130 = vector.extract_strided_slice %127 {offsets = [0, 64], sizes = [16, 32], strides = [1, 1]} : vector<16x128xf32> to vector<16x32xf32>
    %131 = vector.extract_strided_slice %127 {offsets = [0, 96], sizes = [16, 32], strides = [1, 1]} : vector<16x128xf32> to vector<16x32xf32>
    %132 = arith.mulf %129, %111 : vector<16x32xf32>
    %133 = arith.mulf %128, %130 : vector<16x32xf32>
    %134 = arith.addf %132, %133 : vector<16x32xf32>
    %135 = math.tanh %134 : vector<16x32xf32>
    %136 = arith.mulf %131, %135 : vector<16x32xf32>
    %c5_i32 = arith.constant 5 : i32
    %c16_i32_31 = arith.constant 16 : i32
    %137 = arith.muli %c5_i32, %c16_i32_31 : i32
    %138 = tpu.assume_multiple %137, 8 : i32
    %139 = arith.truncf %136 : vector<16x32xf32> to vector<16x32xbf16>
    %cst_32 = arith.constant dense<0.000000e+00> : vector<16x128xf32>
    %140 = tpu.matmul %139, %16, %cst_32 {dimension_numbers = #tpu.dot_dimension_numbers<[1], [0], [0], [1], [0, 0, 1, 1], [], []>} : vector<16x32xbf16>, vector<32x128xbf16>, vector<16x128xf32> -> vector<16x128xf32>
    %141 = arith.index_cast %138 : i32 to index
    %c0_33 = arith.constant 0 : index
    %142 = vector.load %arg8[%141, %c0_33] : memref<128x128xf32, #tpu.memory_space<vmem>>, vector<16x128xf32>
    %143 = arith.addf %140, %142 : vector<16x128xf32>
    %144 = vector.broadcast %12 : vector<1x128xf32> to vector<16x128xf32>
    %145 = arith.mulf %143, %144 : vector<16x128xf32>
    %146 = math.tanh %145 : vector<16x128xf32>
    %147 = vector.broadcast %12 : vector<1x128xf32> to vector<16x128xf32>
    %148 = arith.mulf %146, %147 : vector<16x128xf32>
    %149 = vector.broadcast %15 : vector<1x128xf32> to vector<16x128xf32>
    %150 = arith.addf %148, %149 : vector<16x128xf32>
    %151 = vector.extract_strided_slice %150 {offsets = [0, 0], sizes = [16, 32], strides = [1, 1]} : vector<16x128xf32> to vector<16x32xf32>
    %152 = vector.extract_strided_slice %150 {offsets = [0, 32], sizes = [16, 32], strides = [1, 1]} : vector<16x128xf32> to vector<16x32xf32>
    %153 = vector.extract_strided_slice %150 {offsets = [0, 64], sizes = [16, 32], strides = [1, 1]} : vector<16x128xf32> to vector<16x32xf32>
    %154 = vector.extract_strided_slice %150 {offsets = [0, 96], sizes = [16, 32], strides = [1, 1]} : vector<16x128xf32> to vector<16x32xf32>
    %155 = arith.mulf %152, %134 : vector<16x32xf32>
    %156 = arith.mulf %151, %153 : vector<16x32xf32>
    %157 = arith.addf %155, %156 : vector<16x32xf32>
    %158 = math.tanh %157 : vector<16x32xf32>
    %159 = arith.mulf %154, %158 : vector<16x32xf32>
    %c6_i32 = arith.constant 6 : i32
    %c16_i32_34 = arith.constant 16 : i32
    %160 = arith.muli %c6_i32, %c16_i32_34 : i32
    %161 = tpu.assume_multiple %160, 8 : i32
    %162 = arith.truncf %159 : vector<16x32xf32> to vector<16x32xbf16>
    %cst_35 = arith.constant dense<0.000000e+00> : vector<16x128xf32>
    %163 = tpu.matmul %162, %16, %cst_35 {dimension_numbers = #tpu.dot_dimension_numbers<[1], [0], [0], [1], [0, 0, 1, 1], [], []>} : vector<16x32xbf16>, vector<32x128xbf16>, vector<16x128xf32> -> vector<16x128xf32>
    %164 = arith.index_cast %161 : i32 to index
    %c0_36 = arith.constant 0 : index
    %165 = vector.load %arg8[%164, %c0_36] : memref<128x128xf32, #tpu.memory_space<vmem>>, vector<16x128xf32>
    %166 = arith.addf %163, %165 : vector<16x128xf32>
    %167 = vector.broadcast %12 : vector<1x128xf32> to vector<16x128xf32>
    %168 = arith.mulf %166, %167 : vector<16x128xf32>
    %169 = math.tanh %168 : vector<16x128xf32>
    %170 = vector.broadcast %12 : vector<1x128xf32> to vector<16x128xf32>
    %171 = arith.mulf %169, %170 : vector<16x128xf32>
    %172 = vector.broadcast %15 : vector<1x128xf32> to vector<16x128xf32>
    %173 = arith.addf %171, %172 : vector<16x128xf32>
    %174 = vector.extract_strided_slice %173 {offsets = [0, 0], sizes = [16, 32], strides = [1, 1]} : vector<16x128xf32> to vector<16x32xf32>
    %175 = vector.extract_strided_slice %173 {offsets = [0, 32], sizes = [16, 32], strides = [1, 1]} : vector<16x128xf32> to vector<16x32xf32>
    %176 = vector.extract_strided_slice %173 {offsets = [0, 64], sizes = [16, 32], strides = [1, 1]} : vector<16x128xf32> to vector<16x32xf32>
    %177 = vector.extract_strided_slice %173 {offsets = [0, 96], sizes = [16, 32], strides = [1, 1]} : vector<16x128xf32> to vector<16x32xf32>
    %178 = arith.mulf %175, %157 : vector<16x32xf32>
    %179 = arith.mulf %174, %176 : vector<16x32xf32>
    %180 = arith.addf %178, %179 : vector<16x32xf32>
    %181 = math.tanh %180 : vector<16x32xf32>
    %182 = arith.mulf %177, %181 : vector<16x32xf32>
    %c7_i32 = arith.constant 7 : i32
    %c16_i32_37 = arith.constant 16 : i32
    %183 = arith.muli %c7_i32, %c16_i32_37 : i32
    %184 = tpu.assume_multiple %183, 8 : i32
    %185 = arith.truncf %182 : vector<16x32xf32> to vector<16x32xbf16>
    %cst_38 = arith.constant dense<0.000000e+00> : vector<16x128xf32>
    %186 = tpu.matmul %185, %16, %cst_38 {dimension_numbers = #tpu.dot_dimension_numbers<[1], [0], [0], [1], [0, 0, 1, 1], [], []>} : vector<16x32xbf16>, vector<32x128xbf16>, vector<16x128xf32> -> vector<16x128xf32>
    %187 = arith.index_cast %184 : i32 to index
    %c0_39 = arith.constant 0 : index
    %188 = vector.load %arg8[%187, %c0_39] : memref<128x128xf32, #tpu.memory_space<vmem>>, vector<16x128xf32>
    %189 = arith.addf %186, %188 : vector<16x128xf32>
    %190 = vector.broadcast %12 : vector<1x128xf32> to vector<16x128xf32>
    %191 = arith.mulf %189, %190 : vector<16x128xf32>
    %192 = math.tanh %191 : vector<16x128xf32>
    %193 = vector.broadcast %12 : vector<1x128xf32> to vector<16x128xf32>
    %194 = arith.mulf %192, %193 : vector<16x128xf32>
    %195 = vector.broadcast %15 : vector<1x128xf32> to vector<16x128xf32>
    %196 = arith.addf %194, %195 : vector<16x128xf32>
    %197 = vector.extract_strided_slice %196 {offsets = [0, 0], sizes = [16, 32], strides = [1, 1]} : vector<16x128xf32> to vector<16x32xf32>
    %198 = vector.extract_strided_slice %196 {offsets = [0, 32], sizes = [16, 32], strides = [1, 1]} : vector<16x128xf32> to vector<16x32xf32>
    %199 = vector.extract_strided_slice %196 {offsets = [0, 64], sizes = [16, 32], strides = [1, 1]} : vector<16x128xf32> to vector<16x32xf32>
    %200 = vector.extract_strided_slice %196 {offsets = [0, 96], sizes = [16, 32], strides = [1, 1]} : vector<16x128xf32> to vector<16x32xf32>
    %201 = arith.mulf %198, %180 : vector<16x32xf32>
    %202 = arith.mulf %197, %199 : vector<16x32xf32>
    %203 = arith.addf %201, %202 : vector<16x32xf32>
    %204 = math.tanh %203 : vector<16x32xf32>
    %205 = arith.mulf %200, %204 : vector<16x32xf32>
    %c8_i32 = arith.constant 8 : i32
    %c0_40 = arith.constant 0 : index
    %c0_41 = arith.constant 0 : index
    %206 = vector.load %arg9[%c0_40, %c0_41] : memref<16x32xf32, #tpu.memory_space<vmem>>, vector<16x32xf32>
    tpu.vector_store %arg9[%c0_40, %c0_41], %205 {strides = array<i32>} : memref<16x32xf32, #tpu.memory_space<vmem>>, vector<16x32xf32>,
    %c0_42 = arith.constant 0 : index
    %c0_43 = arith.constant 0 : index
    %207 = vector.load %arg10[%c0_42, %c0_43] : memref<16x32xf32, #tpu.memory_space<vmem>>, vector<16x32xf32>
    tpu.vector_store %arg10[%c0_42, %c0_43], %203 {strides = array<i32>} : memref<16x32xf32, #tpu.memory_space<vmem>>, vector<16x32xf32>,
    %c0_i32_44 = arith.constant 0 : i32
    %208 = arith.cmpi eq, %arg1, %c0_i32_44 : i32
    %209 = arith.extui %208 : i1 to i32
    %c0_i32_45 = arith.constant 0 : i32
    %210 = arith.cmpi ne, %209, %c0_i32_45 : i32
    scf.if %210 {
      %211 = arith.truncf %205 : vector<16x32xf32> to vector<16x32xbf16>
      %c0_46 = arith.constant 0 : index
      %c0_47 = arith.constant 0 : index
      %212 = vector.load %arg5[%c0_46, %c0_47] : memref<32x128xbf16, #tpu.memory_space<vmem>>, vector<32x128xbf16>
      %cst_48 = arith.constant dense<0.000000e+00> : vector<16x128xf32>
      %213 = tpu.matmul %211, %212, %cst_48 {dimension_numbers = #tpu.dot_dimension_numbers<[1], [0], [0], [1], [0, 0, 1, 1], [], []>} : vector<16x32xbf16>, vector<32x128xbf16>, vector<16x128xf32> -> vector<16x128xf32>
      %c0_49 = arith.constant 0 : index
      %c0_50 = arith.constant 0 : index
      %214 = vector.load %arg6[%c0_49, %c0_50] : memref<1x128xf32, #tpu.memory_space<vmem>>, vector<1x128xf32>
      %215 = vector.broadcast %214 : vector<1x128xf32> to vector<16x128xf32>
      %216 = arith.addf %213, %215 : vector<16x128xf32>
      %c0_51 = arith.constant 0 : index
      %c0_52 = arith.constant 0 : index
      %217 = vector.load %arg7[%c0_51, %c0_52] : memref<16x128xf32, #tpu.memory_space<vmem>>, vector<16x128xf32>
      tpu.vector_store %arg7[%c0_51, %c0_52], %216 {strides = array<i32>} : memref<16x128xf32, #tpu.memory_space<vmem>>, vector<16x128xf32>,
    } else {
    }
    return
  }
  func.func @transform_0(%arg0: i32, %arg1: i32) -> (i32, i32) {
    %c1_i32 = arith.constant 1 : i32
    %0 = arith.muli %arg0, %c1_i32 : i32
    %1 = arith.addi %0, %arg1 : i32
    %c0_i32 = arith.constant 0 : i32
    %c0_i32_0 = arith.constant 0 : i32
    return %1, %c0_i32 : i32, i32
  }
  func.func @transform_1(%arg0: i32, %arg1: i32) -> (i32, i32) {
    %c0_i32 = arith.constant 0 : i32
    %c0_i32_0 = arith.constant 0 : i32
    %c0_i32_1 = arith.constant 0 : i32
    return %c0_i32, %c0_i32_0 : i32, i32
  }
  func.func @transform_2(%arg0: i32, %arg1: i32) -> (i32, i32) {
    %c0_i32 = arith.constant 0 : i32
    %c0_i32_0 = arith.constant 0 : i32
    %c0_i32_1 = arith.constant 0 : i32
    return %c0_i32, %c0_i32_0 : i32, i32
  }
  func.func @transform_3(%arg0: i32, %arg1: i32) -> (i32, i32) {
    %c0_i32 = arith.constant 0 : i32
    %c0_i32_0 = arith.constant 0 : i32
    %c0_i32_1 = arith.constant 0 : i32
    return %c0_i32, %c0_i32_0 : i32, i32
  }
  func.func @transform_4(%arg0: i32, %arg1: i32) -> (i32, i32) {
    %c0_i32 = arith.constant 0 : i32
    %c0_i32_0 = arith.constant 0 : i32
    %c0_i32_1 = arith.constant 0 : i32
    return %c0_i32, %c0_i32_0 : i32, i32
  }
  func.func @transform_5(%arg0: i32, %arg1: i32) -> (i32, i32) {
    %c0_i32 = arith.constant 0 : i32
    %c0_i32_0 = arith.constant 0 : i32
    return %arg0, %c0_i32 : i32, i32
  }
}

</mosaic_0001>

<bundles_post_ra>
// kernel: tpu_custom_call.1
= control target key start
LH: loop header
LB: loop body
LE: loop exit
PB: predicated region body
PF: predicated region fallthrough
CT: control target
= control target key end

     0   :  { %v1436_v1 = vmov 0.0   ;;  %vm140_vm0 = vcmask 1045504   ;;  %vm141_vm1 = vcmask 1046528   ;;  %v1437_v4 = vmov 65535   ;;  %s1767_s0 = inlined_call_operand.vmem [shape: bf16[128,29], index: 0, kind: input, shape index: {}]   ;;  %s1768_s1 = inlined_call_operand.vmem [shape: bf16[29,128], index: 1, kind: input, shape index: {}]   ;;  %s1769_s2 = inlined_call_operand.vmem [shape: bf16[32,128], index: 2, kind: input, shape index: {}]   ;;  %s1770_s3 = inlined_call_operand.vmem [shape: bf16[32,128], index: 3, kind: input, shape index: {}]   ;;  %s1771_s4 = inlined_call_operand.vmem [shape: f32[1,128], index: 4, kind: input, shape index: {}]   ;;  %s1772_s5 = inlined_call_operand.hbm [shape: f32[16,128], index: 5, kind: output, shape index: {}]  }
   0x1   :  { %v1334_v0 = vld [vmem:[%s1768_s1] sm:$0xff]   ;;  %1252 = vmatprep.subr.bf16.mxu1 %v1436_v1  ;;  %v1336_v3 = vld [vmem:[%s1768_s1 + $0x8] sm:$0x7f]   ;;  %v142_v5 = vsel %vm140_vm0, 4294967295, %v1437_v4  ;;  %vm115_vm2 = vcmask 236544   ;;  %vm1438_vm3 = vmmov 0  }
   0x2   :  { %v1483_v2 = vld [vmem:[%s1769_s2] sm:$0xff]   ;;  %1232 = vmatprep.subr.bf16.mxu0 %v1334_v0  ;;  %v1493_v6 = vld [vmem:[%s1769_s2 + $0x8] sm:$0xff]   ;;  %v143_v7 = vsel %vm141_vm1, %v142_v5, 0  ;;  %1256 = vmatprep.mubr.msk.bf16.mxu1 %vm1438_vm3, %v1436_v1  ;;  %vm275_vm4 = vcmask 261120  }
   0x3   :  { %1233 = vmatpush3.bf16.msra.mxu0 %v1334_v0  ;;  %1253 = vmatpush3.bf16.msra.mxu1 %v1483_v2  ;;  %v1338_v8 = vld [vmem:[%s1767_s0] sm:$0xff]   ;;  %v145_v9 = vand.u32 %v1336_v3, %v143_v7  ;;  %v1339_v10 = vld [vmem:[%s1767_s0 + $0x8] sm:$0xff]   ;;  %276 = vst.msk [vmem:[#allocation3] sm:$0xff] %vm275_vm4, %v1436_v1  ;;  %277 = vst.msk [vmem:[#allocation3 + $0x8] sm:$0xff] %vm275_vm4, %v1436_v1 }
   0x4   :  { %1254 = vmatprep.subr.bf16.mxu1 %v1436_v1  ;;  %1236 = vmatprep.mubr.msk.bf16.mxu0 %vm115_vm2, %v1338_v8  ;;  %278 = vst.msk [vmem:[#allocation4] sm:$0xff] %vm275_vm4, %v1436_v1  ;;  %279 = vst.msk [vmem:[#allocation4 + $0x8] sm:$0xff] %vm275_vm4, %v1436_v1 }
   0x5   :  { %1234 = vmatprep.subr.bf16.mxu0 %v145_v9 }
   0x7   :  { %1255 = vmatpush3.bf16.msra.mxu1 %v1493_v6  ;;  %1235 = vmatpush3.bf16.msra.mxu0 %v145_v9 }
   0x8   :  { %1260 = vmatprep.subr.bf16.mxu1 %v1436_v1  ;;  %1284 = vmatprep.subr.bf16.mxu0 %v1436_v1 }
   0xa   :  { %1237 = vmatmul.mubr.msk.bf16.vlgmr.msra.gmra.mrb[0].mxu0 %vm115_vm2, %v1339_v10 }
   0xb   :  { %10 = vsyncpa [#allocation6], 0  ;;  %1285 = vmatpush3.bf16.msra.mxu0 %v1483_v2  ;;  %v280_v11 = vld [vmem:[#allocation3] sm:$0xff]  ;;  %v281_v12 = vld [vmem:[#allocation3 + $0x8] sm:$0xff]  ;;  %s1439_s2 = smov 32   ;;  %v260_v16 = vlaneseq  ;;  %v1440_v24 = vmov 0.5  }
   0xc   :  { %v282_v13 = vld [vmem:[#allocation4] sm:$0xff]  ;;  %1286 = vmatprep.subr.bf16.mxu0 %v1436_v1  ;;  %v284_v14 = vpack.c.bf16 %v281_v12, %v280_v11  ;;  %v283_v15 = vld [vmem:[#allocation4 + $0x8] sm:$0xff]  ;;  %s1441_s29 = smov 64   ;;  %s1442_s20 = smov 96  }
   0xd   :  { %354 = vrot.lane.b32.xlu1 %v282_v13, %s1439_s2  ;;  %v261_v17 = vand.u32 127, %v260_v16  ;;  %s1443_s22 = smov [#allocation5]  }
   0xe   :  { %1257 = vmatmul.mubr.msk.bf16.vlgmr.msra.gmra.mrb[0].mxu1 %vm275_vm4, %v284_v14  ;;  %s1146_s23 = sshll.u32 %s1443_s22, 4  ;;  %s1147_s23 = int_to_ptr.vmem [resolvable:$true] %s1146_s23 }
   0xf   :  { %1287 = vmatpush3.bf16.msra.mxu0 %v1493_v6  ;;  %1261 = vmatpush3.bf16.msra.mxu1 %v1483_v2  ;;  %vm262_vm5 = vcmp.ge.s32.totalorder %v261_v17, 64  ;;  %vm263_vm6 = vcmp.lt.s32.totalorder %v261_v17, 96  ;;  %s1412_s24 = scalar_lea.vmem %s1147_s23, 256  ;;  %p1417_p1 = scmp.lt.s32.totalorder %s1147_s23, %s1147_s23 }
  0x10   :  { %1264 = vmatprep.mubr.msk.bf16.mxu1 %vm1438_vm3, %v1436_v1  ;;  %1262 = vmatprep.subr.bf16.mxu1 %v1436_v1  ;;  %vm1529_vm7 = vmand %vm262_vm5, %vm263_vm6  ;;  %p1413_p0 = scmp.ne.s32.totalorder %s1147_s23, %s1412_s24  ;;  %p1418_p2 = scmp.lt.s32.totalorder %s1412_s24, %s1412_s24 }
  0x11   :  { %356 = vrot.lane.b32.xlu1 %v283_v15, %s1439_s2  ;;  %1300 = vmatprep.subr.bf16.mxu0 %v1436_v1  ;;  %v1535_v25 = vsel %vm1529_vm7, 1.0, %v1440_v24  ;;  %v1541_v34 = vsel %vm1529_vm7, 0.0, %v1440_v24  ;;  %v1341_v24 = vld [vmem:[%s1767_s0 + $0x18] sm:$0xff]  }
  0x12   :  { %p1419_p3 = por %p1418_p2, %p1417_p1 }
  0x13   :  { %1263 = vmatpush3.bf16.msra.mxu1 %v1493_v6 }
  0x14   :  { %1268 = vmatprep.subr.bf16.mxu1 %v1436_v1  ;;  %p1420_p4 = pnand %p1419_p3, %p1413_p0 }
  0x7f   :  { %v355_v44 = vpop.permute.xlu1 %354 }
  0x83   :  { %v357_v46 = vpop.permute.xlu1 %356 }
  0xdd   :  { %v1238_v18 = vpop.f32.mrb[0].mxu0 }
  0xde   :  { %v181_v19 = vpop.f32.mrb[1].mxu0 }
  0xdf   :  { %v1239_v21 = vpop.f32.mrb[2].mxu0 }
  0xe0   :  { %v184_v22 = vpop.f32.mrb[3].mxu0 }
  0xe1   :  { %v337_v23 = vpop.f32.mrb[0].mxu1 }
  0xe2   :  { %v338_v26 = vadd.f32 %v337_v23, %v181_v19  ;;  %v1258_v27 = vpop.f32.mrb[1].mxu1  ;;  %v1340_v23 = vld [vmem:[%s1767_s0 + $0x10] sm:$0xff]  }
  0xe3   :  { %v340_v28 = vpop.f32.mrb[2].mxu1  ;;  %1240 = vmatprep.mubr.msk.bf16.mxu0 %vm115_vm2, %v1340_v23 }
  0xe4   :  { %v344_v29 = vmul.f32 %v338_v26, %v1535_v25  ;;  %v341_v30 = vadd.f32 %v340_v28, %v184_v22  ;;  %v1259_v31 = vpop.f32.mrb[3].mxu1  ;;  %1241 = vmatmul.mubr.msk.bf16.gmra.mrb[4].mxu0 %vm115_vm2, %v1341_v24 }
  0xe6   :  { %1348 = vtanh.f32 %v344_v29  ;;  %v345_v32 = vmul.f32 %v341_v30, %v1535_v25 }
  0xe8   :  { %1350 = vtanh.f32 %v345_v32 }
  0xf0   :  { %v1349_v33 = vpop.eup %1348 }
  0xf1   :  { %v348_v35 = vmul.f32 %v1349_v33, %v1535_v25 }
  0xf2   :  { %v1351_v36 = vpop.eup %1350 }
  0xf3   :  { %v350_v37 = vadd.f32 %v348_v35, %v1541_v34  ;;  %v349_v38 = vmul.f32 %v1351_v36, %v1535_v25 }
  0xf5   :  { %364 = vrot.lane.b32.xlu0 %v350_v37, %s1441_s29  ;;  %v351_v39 = vadd.f32 %v349_v38, %v1541_v34  ;;  %v360_v45 = vmul.f32 %v355_v44, %v350_v37 }
  0xf7   :  { %v361_v49 = vmul.f32 %v357_v46, %v351_v39 }
  0xf9   :  { %366 = vrot.lane.b32.xlu0 %v351_v39, %s1441_s29 }
 0x167   :  { %v365_v40 = vpop.permute.xlu0 %364 }
 0x168   :  { %v370_v41 = vmul.f32 %v365_v40, %v350_v37 }
 0x16a   :  { %374 = vrot.lane.b32.xlu0 %v370_v41, %s1439_s2 }
 0x16b   :  { %v367_v42 = vpop.permute.xlu0 %366 }
 0x16c   :  { %v371_v43 = vmul.f32 %v367_v42, %v351_v39 }
 0x16e   :  { %376 = vrot.lane.b32.xlu1 %v371_v43, %s1439_s2 }
 0x1b7   :  { %v1242_v33 = vpop.f32.mrb[4].mxu0 }
 0x1b8   :  { %v197_v35 = vpop.f32.mrb[5].mxu0 }
 0x1b9   :  { %v1582_v36 = vpop.f32.mrb[6].mxu0 }
 0x1dc   :  { %v375_v47 = vpop.permute.xlu0 %374 }
 0x1dd   :  { %v380_v48 = vadd.f32 %v375_v47, %v360_v45 }
 0x1df   :  { %1352 = vtanh.f32 %v380_v48 }
 0x1e0   :  { %v377_v50 = vpop.permute.xlu1 %376 }
 0x1e1   :  { %v381_v51 = vadd.f32 %v377_v50, %v361_v49 }
 0x1e3   :  { %1354 = vtanh.f32 %v381_v51 }
 0x1e9   :  { %v1353_v52 = vpop.eup %1352 }
 0x1ea   :  { %386 = vrot.lane.b32.xlu0 %v1353_v52, %s1441_s29 }
 0x1ed   :  { %v1355_v53 = vpop.eup %1354 }
 0x1ee   :  { %388 = vrot.lane.b32.xlu1 %v1355_v53, %s1441_s29 }
 0x25c   :  { %v387_v54 = vpop.permute.xlu0 %386 }
 0x25d   :  { %v392_v56 = vmul.f32 %v387_v54, %v350_v37  ;;  %v200_v37 = vpop.f32.mrb[7].mxu0 }
 0x260   :  { %v389_v55 = vpop.permute.xlu1 %388 }
 0x261   :  { %v393_v57 = vmul.f32 %v389_v55, %v351_v39 }
 0x263   :  { %v394_v58 = vpack.c.bf16 %v393_v57, %v392_v56 }
 0x265   :  { %399 = vrot.lane.b32.xlu0 %v394_v58, %s1439_s2 }
 0x2d7   :  { %v400_v59 = vpop.permute.xlu0 %399 }
 0x2d8   :  { %1265 = vmatmul.mubr.msk.bf16.vlgmr.msra.gmra.mrb[4].mxu1 %vm275_vm4, %v400_v59 }
 0x2d9   :  { %1269 = vmatpush3.bf16.msra.mxu1 %v1483_v2  ;;  %1272 = vmatprep.mubr.msk.bf16.mxu1 %vm1438_vm3, %v1436_v1 }
 0x2da   :  { %1270 = vmatprep.subr.bf16.mxu1 %v1436_v1 }
 0x2dd   :  { %1271 = vmatpush3.bf16.msra.mxu1 %v1493_v6 }
 0x2de   :  { %1276 = vmatprep.subr.bf16.mxu1 %v1436_v1 }
 0x3ab   :  { %v438_v60 = vpop.f32.mrb[4].mxu1 }
 0x3ac   :  { %v439_v61 = vadd.f32 %v1238_v18, %v438_v60  ;;  %v1266_v62 = vpop.f32.mrb[5].mxu1 }
 0x3ad   :  { %v441_v63 = vpop.f32.mrb[6].mxu1 }
 0x3ae   :  { %v445_v0 = vmul.f32 %v439_v61, %v1535_v25  ;;  %v442_v3 = vadd.f32 %v1239_v21, %v441_v63  ;;  %v1267_v4 = vpop.f32.mrb[7].mxu1 }
 0x3b0   :  { %1356 = vtanh.f32 %v445_v0  ;;  %v446_v5 = vmul.f32 %v442_v3, %v1535_v25 }
 0x3b2   :  { %1358 = vtanh.f32 %v446_v5 }
 0x3ba   :  { %v1357_v7 = vpop.eup %1356 }
 0x3bb   :  { %v449_v8 = vmul.f32 %v1357_v7, %v1535_v25 }
 0x3bc   :  { %v1359_v9 = vpop.eup %1358 }
 0x3bd   :  { %v451_v10 = vadd.f32 %v449_v8, %v1541_v34  ;;  %v450_v11 = vmul.f32 %v1359_v9, %v1535_v25 }
 0x3bf   :  { %457 = vrot.lane.b32.xlu1 %v451_v10, %s1441_s29  ;;  %v452_v12 = vadd.f32 %v450_v11, %v1541_v34  ;;  %v453_v17 = vmul.f32 %v451_v10, %v380_v48 }
 0x3c1   :  { %459 = vrot.lane.b32.xlu0 %v452_v12, %s1441_s29  ;;  %v454_v20 = vmul.f32 %v452_v12, %v381_v51 }
 0x431   :  { %v458_v13 = vpop.permute.xlu1 %457 }
 0x432   :  { %v463_v14 = vmul.f32 %v458_v13, %v451_v10 }
 0x433   :  { %v460_v15 = vpop.permute.xlu0 %459 }
 0x434   :  { %v464_v16 = vmul.f32 %v460_v15, %v452_v12  ;;  %467 = vrot.lane.b32.xlu1 %v463_v14, %s1439_s2 }
 0x436   :  { %469 = vrot.lane.b32.xlu0 %v464_v16, %s1439_s2 }
 0x4a6   :  { %v468_v18 = vpop.permute.xlu1 %467 }
 0x4a7   :  { %v473_v19 = vadd.f32 %v468_v18, %v453_v17 }
 0x4a8   :  { %v470_v21 = vpop.permute.xlu0 %469 }
 0x4a9   :  { %1360 = vtanh.f32 %v473_v19  ;;  %v474_v22 = vadd.f32 %v470_v21, %v454_v20 }
 0x4ab   :  { %1362 = vtanh.f32 %v474_v22 }
 0x4b3   :  { %v1361_v26 = vpop.eup %1360 }
 0x4b4   :  { %479 = vrot.lane.b32.xlu1 %v1361_v26, %s1441_s29 }
 0x4b5   :  { %v1363_v27 = vpop.eup %1362 }
 0x4b6   :  { %481 = vrot.lane.b32.xlu0 %v1363_v27, %s1441_s29 }
 0x526   :  { %v480_v28 = vpop.permute.xlu1 %479 }
 0x527   :  { %v485_v30 = vmul.f32 %v480_v28, %v451_v10 }
 0x528   :  { %v482_v29 = vpop.permute.xlu0 %481 }
 0x529   :  { %v486_v31 = vmul.f32 %v482_v29, %v452_v12 }
 0x52b   :  { %v487_v32 = vpack.c.bf16 %v486_v31, %v485_v30 }
 0x52d   :  { %492 = vrot.lane.b32.xlu1 %v487_v32, %s1439_s2 }
 0x59f   :  { %v493_v38 = vpop.permute.xlu1 %492 }
 0x5a0   :  { %1273 = vmatmul.mubr.msk.bf16.vlgmr.msra.gmra.mrb[8].mxu1 %vm275_vm4, %v493_v38  ;;  %v1344_v38 = vld [vmem:[%s1767_s0 + $0x30] sm:$0xff]  }
 0x5a1   :  { %1277 = vmatpush3.bf16.msra.mxu1 %v1483_v2  ;;  %1280 = vmatprep.mubr.msk.bf16.mxu1 %vm1438_vm3, %v1436_v1 }
 0x5a2   :  { %1278 = vmatprep.subr.bf16.mxu1 %v1436_v1 }
 0x5a5   :  { %1279 = vmatpush3.bf16.msra.mxu1 %v1493_v6 }
 0x5a6   :  { %1292 = vmatprep.subr.bf16.mxu1 %v1436_v1 }
 0x673   :  { %v531_v39 = vpop.f32.mrb[8].mxu1 }
 0x674   :  { %v532_v40 = vadd.f32 %v531_v39, %v197_v35  ;;  %v1274_v41 = vpop.f32.mrb[9].mxu1 }
 0x675   :  { %v534_v42 = vpop.f32.mrb[10].mxu1 }
 0x676   :  { %v538_v43 = vmul.f32 %v532_v40, %v1535_v25  ;;  %v535_v44 = vadd.f32 %v534_v42, %v200_v37  ;;  %v1275_v45 = vpop.f32.mrb[11].mxu1  ;;  %v1343_v37 = vld [vmem:[%s1767_s0 + $0x28] sm:$0xff]   ;;  %v1345_v40 = vld [vmem:[%s1767_s0 + $0x38] sm:$0xff]  }
 0x678   :  { %1364 = vtanh.f32 %v538_v43  ;;  %v539_v46 = vmul.f32 %v535_v44, %v1535_v25 }
 0x67a   :  { %1366 = vtanh.f32 %v539_v46 }
 0x682   :  { %v1365_v47 = vpop.eup %1364 }
 0x683   :  { %v542_v48 = vmul.f32 %v1365_v47, %v1535_v25 }
 0x684   :  { %v1367_v49 = vpop.eup %1366 }
 0x685   :  { %v544_v50 = vadd.f32 %v542_v48, %v1541_v34  ;;  %v543_v51 = vmul.f32 %v1367_v49, %v1535_v25 }
 0x687   :  { %550 = vrot.lane.b32.xlu0 %v544_v50, %s1441_s29  ;;  %v545_v52 = vadd.f32 %v543_v51, %v1541_v34  ;;  %v546_v57 = vmul.f32 %v544_v50, %v473_v19 }
 0x689   :  { %552 = vrot.lane.b32.xlu1 %v545_v52, %s1441_s29  ;;  %v547_v60 = vmul.f32 %v545_v52, %v474_v22 }
 0x6f9   :  { %v551_v53 = vpop.permute.xlu0 %550 }
 0x6fa   :  { %v556_v54 = vmul.f32 %v551_v53, %v544_v50 }
 0x6fb   :  { %v553_v55 = vpop.permute.xlu1 %552 }
 0x6fc   :  { %v557_v56 = vmul.f32 %v553_v55, %v545_v52  ;;  %560 = vrot.lane.b32.xlu0 %v556_v54, %s1439_s2 }
 0x6fe   :  { %562 = vrot.lane.b32.xlu1 %v557_v56, %s1439_s2 }
 0x76e   :  { %v561_v58 = vpop.permute.xlu0 %560 }
 0x76f   :  { %v566_v59 = vadd.f32 %v561_v58, %v546_v57 }
 0x770   :  { %v563_v61 = vpop.permute.xlu1 %562 }
 0x771   :  { %1368 = vtanh.f32 %v566_v59  ;;  %v567_v62 = vadd.f32 %v563_v61, %v547_v60 }
 0x773   :  { %1370 = vtanh.f32 %v567_v62 }
 0x77b   :  { %v1369_v63 = vpop.eup %1368 }
 0x77c   :  { %572 = vrot.lane.b32.xlu0 %v1369_v63, %s1441_s29 }
 0x77d   :  { %v1371_v0 = vpop.eup %1370 }
 0x77e   :  { %574 = vrot.lane.b32.xlu1 %v1371_v0, %s1441_s29 }
 0x7ee   :  { %v573_v3 = vpop.permute.xlu0 %572 }
 0x7ef   :  { %v578_v5 = vmul.f32 %v573_v3, %v544_v50 }
 0x7f0   :  { %v575_v4 = vpop.permute.xlu1 %574 }
 0x7f1   :  { %v579_v7 = vmul.f32 %v575_v4, %v545_v52 }
 0x7f3   :  { %v580_v8 = vpack.c.bf16 %v579_v7, %v578_v5 }
 0x7f5   :  { %585 = vrot.lane.b32.xlu0 %v580_v8, %s1439_s2 }
 0x867   :  { %v586_v9 = vpop.permute.xlu0 %585 }
 0x868   :  { %1281 = vmatmul.mubr.msk.bf16.vlgmr.msra.gmra.mrb[12].mxu1 %vm275_vm4, %v586_v9 }
 0x869   :  { %1293 = vmatpush3.bf16.msra.mxu1 %v1483_v2  ;;  %1296 = vmatprep.mubr.msk.bf16.mxu1 %vm1438_vm3, %v1436_v1 }
 0x86a   :  { %1294 = vmatprep.subr.bf16.mxu1 %v1436_v1 }
 0x86d   :  { %1295 = vmatpush3.bf16.msra.mxu1 %v1493_v6 }
 0x86e   :  { %1308 = vmatprep.subr.bf16.mxu1 %v1436_v1 }
 0x93b   :  { %v624_v10 = vpop.f32.mrb[12].mxu1 }
 0x93c   :  { %v625_v11 = vadd.f32 %v1242_v33, %v624_v10  ;;  %v1282_v12 = vpop.f32.mrb[13].mxu1 }
 0x93d   :  { %v627_v13 = vpop.f32.mrb[14].mxu1 }
 0x93e   :  { %v631_v14 = vmul.f32 %v625_v11, %v1535_v25  ;;  %v628_v15 = vadd.f32 %v1582_v36, %v627_v13  ;;  %v1283_v16 = vpop.f32.mrb[15].mxu1  ;;  %v1342_v36 = vld [vmem:[%s1767_s0 + $0x20] sm:$0xff]  }
 0x93f   :  { %1244 = vmatprep.mubr.msk.bf16.mxu0 %vm115_vm2, %v1342_v36 }
 0x940   :  { %1372 = vtanh.f32 %v631_v14  ;;  %v632_v17 = vmul.f32 %v628_v15, %v1535_v25  ;;  %1245 = vmatmul.mubr.msk.bf16.gmra.mrb[8].mxu0 %vm115_vm2, %v1343_v37 }
 0x941   :  { %1248 = vmatprep.mubr.msk.bf16.mxu0 %vm115_vm2, %v1344_v38 }
 0x942   :  { %1374 = vtanh.f32 %v632_v17 }
 0x948   :  { %1249 = vmatmul.mubr.msk.bf16.gmra.mrb[12].mxu0 %vm115_vm2, %v1345_v40 }
 0x949   :  { %1288 = vmatprep.mubr.msk.bf16.mxu0 %vm1438_vm3, %v1436_v1 }
 0x94a   :  { %v1373_v18 = vpop.eup %1372 }
 0x94b   :  { %v635_v19 = vmul.f32 %v1373_v18, %v1535_v25 }
 0x94c   :  { %v1375_v20 = vpop.eup %1374 }
 0x94d   :  { %v637_v21 = vadd.f32 %v635_v19, %v1541_v34  ;;  %v636_v22 = vmul.f32 %v1375_v20, %v1535_v25 }
 0x94f   :  { %643 = vrot.lane.b32.xlu1 %v637_v21, %s1441_s29  ;;  %v638_v23 = vadd.f32 %v636_v22, %v1541_v34  ;;  %v639_v29 = vmul.f32 %v637_v21, %v566_v59 }
 0x951   :  { %645 = vrot.lane.b32.xlu0 %v638_v23, %s1441_s29  ;;  %v640_v32 = vmul.f32 %v638_v23, %v567_v62 }
 0x9c1   :  { %v644_v24 = vpop.permute.xlu1 %643 }
 0x9c2   :  { %v649_v26 = vmul.f32 %v644_v24, %v637_v21 }
 0x9c3   :  { %v646_v27 = vpop.permute.xlu0 %645 }
 0x9c4   :  { %v650_v28 = vmul.f32 %v646_v27, %v638_v23  ;;  %653 = vrot.lane.b32.xlu1 %v649_v26, %s1439_s2 }
 0x9c6   :  { %655 = vrot.lane.b32.xlu0 %v650_v28, %s1439_s2 }
 0xa13   :  { %v1649_v47 = vpop.f32.mrb[8].mxu0 }
 0xa14   :  { %v213_v48 = vpop.f32.mrb[9].mxu0 }
 0xa15   :  { %v1651_v49 = vpop.f32.mrb[10].mxu0 }
 0xa16   :  { %v216_v50 = vpop.f32.mrb[11].mxu0 }
 0xa1b   :  { %v1653_v51 = vpop.f32.mrb[12].mxu0 }
 0xa1c   :  { %v1655_v52 = vpop.f32.mrb[13].mxu0 }
 0xa1d   :  { %v1657_v53 = vpop.f32.mrb[14].mxu0 }
 0xa1e   :  { %v1659_v54 = vpop.f32.mrb[15].mxu0 }
 0xa36   :  { %v654_v30 = vpop.permute.xlu1 %653 }
 0xa37   :  { %v1622_v31 = vadd.f32 %v654_v30, %v639_v29 }
 0xa38   :  { %v656_v33 = vpop.permute.xlu0 %655 }
 0xa39   :  { %1376 = vtanh.f32 %v1622_v31  ;;  %v1625_v35 = vadd.f32 %v656_v33, %v640_v32 }
 0xa3b   :  { %1378 = vtanh.f32 %v1625_v35 }
 0xa43   :  { %v1377_v39 = vpop.eup %1376 }
 0xa44   :  { %665 = vrot.lane.b32.xlu1 %v1377_v39, %s1441_s29 }
 0xa45   :  { %v1379_v41 = vpop.eup %1378 }
 0xa46   :  { %667 = vrot.lane.b32.xlu0 %v1379_v41, %s1441_s29 }
 0xab6   :  { %v666_v42 = vpop.permute.xlu1 %665 }
 0xab7   :  { %v671_v44 = vmul.f32 %v666_v42, %v637_v21 }
 0xab8   :  { %v668_v43 = vpop.permute.xlu0 %667 }
 0xab9   :  { %v672_v45 = vmul.f32 %v668_v43, %v638_v23 }
 0xabb   :  { %v673_v46 = vpack.c.bf16 %v672_v45, %v671_v44 }
 0xabd   :  { %678 = vrot.lane.b32.xlu1 %v673_v46, %s1439_s2 }
 0xb2f   :  { %v679_v55 = vpop.permute.xlu1 %678 }
 0xb30   :  { %1289 = vmatmul.mubr.msk.bf16.vlgmr.msra.gmra.mrb[16].mxu0 %vm275_vm4, %v679_v55 }
 0xb31   :  { %1301 = vmatpush3.bf16.msra.mxu0 %v1483_v2  ;;  %1304 = vmatprep.mubr.msk.bf16.mxu0 %vm1438_vm3, %v1436_v1 }
 0xb32   :  { %1302 = vmatprep.subr.bf16.mxu0 %v1436_v1 }
 0xb35   :  { %1303 = vmatpush3.bf16.msra.mxu0 %v1493_v6 }
 0xb36   :  { %1316 = vmatprep.subr.bf16.mxu0 %v1436_v1 }
 0xc03   :  { %v717_v56 = vpop.f32.mrb[16].mxu0 }
 0xc04   :  { %v718_v57 = vadd.f32 %v717_v56, %v213_v48  ;;  %v1290_v58 = vpop.f32.mrb[17].mxu0 }
 0xc05   :  { %v720_v59 = vpop.f32.mrb[18].mxu0 }
 0xc06   :  { %v724_v60 = vmul.f32 %v718_v57, %v1535_v25  ;;  %v721_v61 = vadd.f32 %v720_v59, %v216_v50  ;;  %v1291_v62 = vpop.f32.mrb[19].mxu0 }
 0xc08   :  { %1380 = vtanh.f32 %v724_v60  ;;  %v725_v63 = vmul.f32 %v721_v61, %v1535_v25 }
 0xc0a   :  { %1382 = vtanh.f32 %v725_v63 }
 0xc12   :  { %v1381_v0 = vpop.eup %1380 }
 0xc13   :  { %v728_v3 = vmul.f32 %v1381_v0, %v1535_v25 }
 0xc14   :  { %v1383_v4 = vpop.eup %1382 }
 0xc15   :  { %v730_v5 = vadd.f32 %v728_v3, %v1541_v34  ;;  %v729_v7 = vmul.f32 %v1383_v4, %v1535_v25 }
 0xc17   :  { %736 = vrot.lane.b32.xlu0 %v730_v5, %s1441_s29  ;;  %v731_v8 = vadd.f32 %v729_v7, %v1541_v34  ;;  %v732_v13 = vmul.f32 %v730_v5, %v1622_v31 }
 0xc19   :  { %738 = vrot.lane.b32.xlu1 %v731_v8, %s1441_s29  ;;  %v733_v16 = vmul.f32 %v731_v8, %v1625_v35 }
 0xc89   :  { %v737_v9 = vpop.permute.xlu0 %736 }
 0xc8a   :  { %v742_v10 = vmul.f32 %v737_v9, %v730_v5 }
 0xc8b   :  { %v739_v11 = vpop.permute.xlu1 %738 }
 0xc8c   :  { %v743_v12 = vmul.f32 %v739_v11, %v731_v8  ;;  %746 = vrot.lane.b32.xlu0 %v742_v10, %s1439_s2 }
 0xc8e   :  { %748 = vrot.lane.b32.xlu1 %v743_v12, %s1439_s2 }
 0xcfe   :  { %v747_v14 = vpop.permute.xlu0 %746 }
 0xcff   :  { %v752_v15 = vadd.f32 %v747_v14, %v732_v13 }
 0xd00   :  { %v749_v17 = vpop.permute.xlu1 %748 }
 0xd01   :  { %1384 = vtanh.f32 %v752_v15  ;;  %v753_v18 = vadd.f32 %v749_v17, %v733_v16 }
 0xd03   :  { %1386 = vtanh.f32 %v753_v18 }
 0xd0b   :  { %v1385_v19 = vpop.eup %1384 }
 0xd0c   :  { %758 = vrot.lane.b32.xlu0 %v1385_v19, %s1441_s29 }
 0xd0d   :  { %v1387_v20 = vpop.eup %1386 }
 0xd0e   :  { %760 = vrot.lane.b32.xlu1 %v1387_v20, %s1441_s29 }
 0xd7e   :  { %v759_v21 = vpop.permute.xlu0 %758 }
 0xd7f   :  { %v764_v23 = vmul.f32 %v759_v21, %v730_v5 }
 0xd80   :  { %v761_v22 = vpop.permute.xlu1 %760 }
 0xd81   :  { %v765_v24 = vmul.f32 %v761_v22, %v731_v8 }
 0xd83   :  { %v766_v26 = vpack.c.bf16 %v765_v24, %v764_v23 }
 0xd85   :  { %771 = vrot.lane.b32.xlu0 %v766_v26, %s1439_s2 }
 0xdf7   :  { %v772_v27 = vpop.permute.xlu0 %771 }
 0xdf8   :  { %1297 = vmatmul.mubr.msk.bf16.vlgmr.msra.gmra.mrb[16].mxu1 %vm275_vm4, %v772_v27 }
 0xdf9   :  { %1309 = vmatpush3.bf16.msra.mxu1 %v1483_v2  ;;  %1312 = vmatprep.mubr.msk.bf16.mxu1 %vm1438_vm3, %v1436_v1 }
 0xdfa   :  { %1310 = vmatprep.subr.bf16.mxu1 %v1436_v1 }
 0xdfd   :  { %1311 = vmatpush3.bf16.msra.mxu1 %v1493_v6 }
 0xecb   :  { %v810_v28 = vpop.f32.mrb[16].mxu1 }
 0xecc   :  { %v811_v29 = vadd.f32 %v1649_v47, %v810_v28  ;;  %v1298_v30 = vpop.f32.mrb[17].mxu1 }
 0xecd   :  { %v813_v31 = vpop.f32.mrb[18].mxu1 }
 0xece   :  { %v817_v32 = vmul.f32 %v811_v29, %v1535_v25  ;;  %v814_v33 = vadd.f32 %v1651_v49, %v813_v31  ;;  %v1299_v35 = vpop.f32.mrb[19].mxu1 }
 0xed0   :  { %1388 = vtanh.f32 %v817_v32  ;;  %v818_v2 = vmul.f32 %v814_v33, %v1535_v25 }
 0xed2   :  { %1390 = vtanh.f32 %v818_v2 }
 0xeda   :  { %v1389_v36 = vpop.eup %1388 }
 0xedb   :  { %v821_v37 = vmul.f32 %v1389_v36, %v1535_v25 }
 0xedc   :  { %v1391_v38 = vpop.eup %1390 }
 0xedd   :  { %v823_v6 = vadd.f32 %v821_v37, %v1541_v34  ;;  %v822_v39 = vmul.f32 %v1391_v38, %v1535_v25 }
 0xedf   :  { %829 = vrot.lane.b32.xlu1 %v823_v6, %s1441_s29  ;;  %v824_v40 = vadd.f32 %v822_v39, %v1541_v34  ;;  %v825_v45 = vmul.f32 %v823_v6, %v752_v15 }
 0xee1   :  { %831 = vrot.lane.b32.xlu0 %v824_v40, %s1441_s29  ;;  %v826_v48 = vmul.f32 %v824_v40, %v753_v18 }
 0xf51   :  { %v830_v41 = vpop.permute.xlu1 %829 }
 0xf52   :  { %v835_v42 = vmul.f32 %v830_v41, %v823_v6 }
 0xf53   :  { %v832_v43 = vpop.permute.xlu0 %831 }
 0xf54   :  { %v836_v44 = vmul.f32 %v832_v43, %v824_v40  ;;  %839 = vrot.lane.b32.xlu1 %v835_v42, %s1439_s2 }
 0xf56   :  { %841 = vrot.lane.b32.xlu0 %v836_v44, %s1439_s2 }
 0xfc6   :  { %v840_v46 = vpop.permute.xlu1 %839 }
 0xfc7   :  { %v845_v47 = vadd.f32 %v840_v46, %v825_v45 }
 0xfc8   :  { %v842_v49 = vpop.permute.xlu0 %841 }
 0xfc9   :  { %1392 = vtanh.f32 %v845_v47  ;;  %v846_v50 = vadd.f32 %v842_v49, %v826_v48 }
 0xfcb   :  { %1394 = vtanh.f32 %v846_v50 }
 0xfd3   :  { %v1393_v55 = vpop.eup %1392 }
 0xfd4   :  { %851 = vrot.lane.b32.xlu1 %v1393_v55, %s1441_s29 }
 0xfd5   :  { %v1395_v56 = vpop.eup %1394 }
 0xfd6   :  { %853 = vrot.lane.b32.xlu0 %v1395_v56, %s1441_s29 }
0x1046   :  { %v852_v57 = vpop.permute.xlu1 %851 }
0x1047   :  { %v857_v59 = vmul.f32 %v852_v57, %v823_v6 }
0x1048   :  { %v854_v58 = vpop.permute.xlu0 %853 }
0x1049   :  { %v858_v60 = vmul.f32 %v854_v58, %v824_v40  ;;  %v1346_v58 = vld [vmem:[%s1770_s3] sm:$0xff]  }
0x104b   :  { %v859_v61 = vpack.c.bf16 %v858_v60, %v857_v59  ;;  %v1347_v59 = vld [vmem:[%s1770_s3 + $0x8] sm:$0xff]  }
0x104d   :  { %864 = vrot.lane.b32.xlu1 %v859_v61, %s1439_s2 }
0x10bf   :  { %v865_v62 = vpop.permute.xlu1 %864 }
0x10c0   :  { %1305 = vmatmul.mubr.msk.bf16.vlgmr.msra.gmra.mrb[20].mxu0 %vm275_vm4, %v865_v62 }
0x10c1   :  { %1320 = vmatprep.mubr.msk.bf16.mxu0 %vm1438_vm3, %v1436_v1  ;;  %1317 = vmatpush3.bf16.msra.mxu0 %v1346_v58 }
0x10c2   :  { %1318 = vmatprep.subr.bf16.mxu0 %v1436_v1 }
0x10c5   :  { %1319 = vmatpush3.bf16.msra.mxu0 %v1347_v59 }
0x1193   :  { %v903_v63 = vpop.f32.mrb[20].mxu0 }
0x1194   :  { %v904_v0 = vadd.f32 %v903_v63, %v1655_v52  ;;  %v1306_v3 = vpop.f32.mrb[21].mxu0 }
0x1195   :  { %v906_v4 = vpop.f32.mrb[22].mxu0 }
0x1196   :  { %v910_v5 = vmul.f32 %v904_v0, %v1535_v25  ;;  %v907_v7 = vadd.f32 %v906_v4, %v1659_v54  ;;  %v1307_v8 = vpop.f32.mrb[23].mxu0 }
0x1197   :  { %v1191_v8 = vld [vmem:[%s1771_s4] ss:$0 sm:$0xff] }
0x1198   :  { %1396 = vtanh.f32 %v910_v5  ;;  %v911_v9 = vmul.f32 %v907_v7, %v1535_v25 }
0x119a   :  { %1398 = vtanh.f32 %v911_v9 }
0x11a2   :  { %v1397_v10 = vpop.eup %1396 }
0x11a3   :  { %v914_v11 = vmul.f32 %v1397_v10, %v1535_v25 }
0x11a4   :  { %v1399_v12 = vpop.eup %1398 }
0x11a5   :  { %v916_v13 = vadd.f32 %v914_v11, %v1541_v34  ;;  %v915_v14 = vmul.f32 %v1399_v12, %v1535_v25 }
0x11a7   :  { %922 = vrot.lane.b32.xlu0 %v916_v13, %s1441_s29  ;;  %v917_v52 = vadd.f32 %v915_v14, %v1541_v34  ;;  %v918_v18 = vmul.f32 %v916_v13, %v845_v47 }
0x11a9   :  { %924 = vrot.lane.b32.xlu1 %v917_v52, %s1441_s29  ;;  %v919_v21 = vmul.f32 %v917_v52, %v846_v50 }
0x1219   :  { %v923_v54 = vpop.permute.xlu0 %922 }
0x121a   :  { %v928_v15 = vmul.f32 %v923_v54, %v916_v13 }
0x121b   :  { %v925_v16 = vpop.permute.xlu1 %924 }
0x121c   :  { %v929_v17 = vmul.f32 %v925_v16, %v917_v52  ;;  %932 = vrot.lane.b32.xlu0 %v928_v15, %s1439_s2 }
0x121e   :  { %934 = vrot.lane.b32.xlu1 %v929_v17, %s1439_s2 }
0x128e   :  { %v933_v19 = vpop.permute.xlu0 %932 }
0x128f   :  { %v938_v20 = vadd.f32 %v933_v19, %v918_v18 }
0x1290   :  { %v935_v22 = vpop.permute.xlu1 %934 }
0x1291   :  { %1400 = vtanh.f32 %v938_v20  ;;  %v939_v23 = vadd.f32 %v935_v22, %v919_v21 }
0x1293   :  { %1402 = vtanh.f32 %v939_v23 }
0x129b   :  { %v1401_v24 = vpop.eup %1400 }
0x129c   :  { %944 = vrot.lane.b32.xlu0 %v1401_v24, %s1441_s29 }
0x129d   :  { %v1403_v26 = vpop.eup %1402 }
0x129e   :  { %946 = vrot.lane.b32.xlu1 %v1403_v26, %s1441_s29 }
0x130e   :  { %v945_v27 = vpop.permute.xlu0 %944 }
0x130f   :  { %v950_v29 = vmul.f32 %v945_v27, %v916_v13 }
0x1310   :  { %v947_v28 = vpop.permute.xlu1 %946 }
0x1311   :  { %v951_v30 = vmul.f32 %v947_v28, %v917_v52 }
0x1313   :  { %v952_v31 = vpack.c.bf16 %v951_v30, %v950_v29 }
0x1315   :  { %957 = vrot.lane.b32.xlu0 %v952_v31, %s1439_s2 }
0x1387   :  { %v958_v32 = vpop.permute.xlu0 %957 }
0x1388   :  { %1313 = vmatmul.mubr.msk.bf16.vlgmr.msra.gmra.mrb[20].mxu1 %vm275_vm4, %v958_v32 }
0x145b   :  { %v996_v33 = vpop.f32.mrb[20].mxu1 }
0x145c   :  { %v997_v35 = vadd.f32 %v1653_v51, %v996_v33  ;;  %v1314_v2 = vpop.f32.mrb[21].mxu1 }
0x145d   :  { %v999_v36 = vpop.f32.mrb[22].mxu1 }
0x145e   :  { %v1003_v37 = vmul.f32 %v997_v35, %v1535_v25  ;;  %v1000_v38 = vadd.f32 %v1657_v53, %v999_v36  ;;  %v1315_v6 = vpop.f32.mrb[23].mxu1 }
0x1460   :  { %1404 = vtanh.f32 %v1003_v37  ;;  %v1004_v39 = vmul.f32 %v1000_v38, %v1535_v25 }
0x1462   :  { %1406 = vtanh.f32 %v1004_v39 }
0x146a   :  { %v1405_v40 = vpop.eup %1404 }
0x146b   :  { %v1007_v41 = vmul.f32 %v1405_v40, %v1535_v25 }
0x146c   :  { %v1407_v42 = vpop.eup %1406 }
0x146d   :  { %v1009_v43 = vadd.f32 %v1007_v41, %v1541_v34  ;;  %v1008_v44 = vmul.f32 %v1407_v42, %v1535_v25 }
0x146f   :  { %1015 = vrot.lane.b32.xlu1 %v1009_v43, %s1441_s29  ;;  %v1010_v51 = vadd.f32 %v1008_v44, %v1541_v34  ;;  %v1011_v48 = vmul.f32 %v1009_v43, %v938_v20 }
0x1471   :  { %1017 = vrot.lane.b32.xlu0 %v1010_v51, %s1441_s29  ;;  %v1012_v55 = vmul.f32 %v1010_v51, %v939_v23 }
0x14e1   :  { %v1016_v53 = vpop.permute.xlu1 %1015 }
0x14e2   :  { %v1021_v45 = vmul.f32 %v1016_v53, %v1009_v43 }
0x14e3   :  { %v1018_v46 = vpop.permute.xlu0 %1017 }
0x14e4   :  { %v1022_v47 = vmul.f32 %v1018_v46, %v1010_v51  ;;  %1025 = vrot.lane.b32.xlu1 %v1021_v45, %s1439_s2 }
0x14e6   :  { %1027 = vrot.lane.b32.xlu0 %v1022_v47, %s1439_s2 }
0x1556   :  { %v1026_v49 = vpop.permute.xlu1 %1025 }
0x1557   :  { %v1031_v50 = vadd.f32 %v1026_v49, %v1011_v48 }
0x1558   :  { %v1028_v56 = vpop.permute.xlu0 %1027 }
0x1559   :  { %1408 = vtanh.f32 %v1031_v50  ;;  %v1032_v25 = vadd.f32 %v1028_v56, %v1012_v55 }
0x155b   :  { %1410 = vtanh.f32 %v1032_v25 }
0x1563   :  { %v1409_v57 = vpop.eup %1408 }
0x1564   :  { %1037 = vrot.lane.b32.xlu1 %v1409_v57, %s1441_s29 }
0x1565   :  { %v1411_v34 = vpop.eup %1410 }
0x1566   :  { %1039 = vrot.lane.b32.xlu0 %v1411_v34, %s1441_s29 }
0x15d6   :  { %v1038_v60 = vpop.permute.xlu1 %1037 }
0x15d7   :  { %v1043_v61 = vmul.f32 %v1038_v60, %v1009_v43 }
0x15d8   :  { %v1040_v62 = vpop.permute.xlu0 %1039 }
0x15d9   :  { %v1044_v63 = vmul.f32 %v1040_v62, %v1010_v51  ;;  %1047 = vrot.lane.b32.xlu0 %v1043_v61, %s1439_s2 }
0x15db   :  { %v1068_v0 = vpack.c.bf16 %v1044_v63, %v1043_v61 }
0x15dd   :  { %1057 = vrot.lane.b32.xlu0 %v1031_v50, %s1442_s20  ;;  %1081 = vrot.lane.b32.xlu1 %v1068_v0, %s1439_s2 }
0x15e1   :  { %1049 = vrot.lane.b32.xlu1 %v1044_v63, %s1439_s2 }
0x15e5   :  { %1059 = vrot.lane.b32.xlu1 %v1032_v25, %s1442_s20 }
0x164b   :  { %v1048_v1 = vpop.permute.xlu0 %1047 }
0x164c   :  { %1053 = vst.msk [vmem:[#allocation3] sm:$0xff] %vm275_vm4, %v1048_v1 }
0x164f   :  { %v1082_v3 = vpop.permute.xlu1 %1081  ;;  %v1058_v4 = vpop.permute.xlu0 %1057 }
0x1650   :  { %1063 = vst.msk [vmem:[#allocation4] sm:$0xff] %vm275_vm4, %v1058_v4  ;;  %1321 = vmatmul.mubr.msk.bf16.vlgmr.msra.gmra.mrb[24].mxu0 %vm275_vm4, %v1082_v3 }
0x1653   :  { %v1050_v5 = vpop.permute.xlu1 %1049 }
0x1654   :  { %1054 = vst.msk [vmem:[#allocation3 + $0x8] sm:$0xff] %vm275_vm4, %v1050_v5 }
0x1657   :  { %v1060_v7 = vpop.permute.xlu1 %1059 }
0x1658   :  { %1064 = vst.msk [vmem:[#allocation4 + $0x8] sm:$0xff] %vm275_vm4, %v1060_v7 }
0x1723   :  { %v1132_v9 = vpop.f32.mrb[24].mxu0 }
0x1724   :  { %v1133_v10 = vadd.f32 %v1191_v8, %v1132_v9  ;;  %v1322_v11 = vpop.f32.mrb[25].mxu0 }
0x1725   :  { %v1135_v12 = vpop.f32.mrb[26].mxu0 }
0x1726   :  { %1139 = vst [vmem:[#allocation5] sm:$0xff] %v1133_v10  ;;  %v1136_v13 = vadd.f32 %v1191_v8, %v1135_v12  ;;  %v1323_v14 = vpop.f32.mrb[27].mxu0 }
0x1728   :  { %1140 = vst [vmem:[#allocation5 + $0x8] sm:$0xff] %v1136_v13 }
0x1729   :  { %1423 = shalt.err (!%p1420_p4)
}
0x172a   :  { %s1424_s26 = scalar_lea.hbm %s1772_s5, 256 }
0x172b   :  { %p1425_p5 = scmp.ne.s32.totalorder %s1772_s5, %s1424_s26  ;;  %p1428_p6 = scmp.lt.u32.totalorder %s1424_s26, %s1772_s5 }
0x172d   :  { %p1430_p7 = pnand %p1428_p6, %p1425_p5 }
0x172f   :  { %1433 = shalt.err (!%p1430_p7)
}
0x1730   :  { %s1444_s29 = smov 128   ;;  %s1445_s30 = smov 8  }
0x1731   :  { %1152 = dma.vmem_to_hbm [thread:$0]  %s1147_s23, 256, %s1772_s5, [#allocation6], %s1444_s29, %s1444_s29, %s1445_s30  }
0x1732   :  { %1434 = dma.done.wait [#allocation6], 256  }
0x1733   :  { %1435 = vsyncadd [#allocation6], 4294967040 }
0x1734   :  { %1156 = vsyncpa [#allocation6], 1 }

</bundles_post_ra>
